<compile_context>
chip_gen: v6e
topology: v6e:2x2x1
jax: 0.10.0
libtpu: 0.0.40
codegen_flags: <defaults>
</compile_context>

<pallas_src>
import functools
import math

import jax
import jax.numpy as jnp
from jax.experimental import pallas as pl
from jax.experimental.pallas import tpu as pltpu


def _tversky_partial_kernel(yp_ref, yt_ref, tp_out, den_out, tp_acc, den_acc, *,
                            alpha, beta, threshold, r_blk, lane_tile,
                            tail_valid):
    """Accumulate per-(pseudo-)row partial sums of tp and alpha*P + beta*T."""
    k = pl.program_id(1)                      # innermost: lane/reduction axis
    k_last = pl.num_programs(1) - 1

    @pl.when(k == 0)
    def _init():
        tp_acc[...] = jnp.zeros_like(tp_acc)
        den_acc[...] = jnp.zeros_like(den_acc)

    def _accumulate(lane_mask=None):
        # Compare in the input's native dtype; f32 only via the bool->f32 cast.
        pm = jnp.abs(yp_ref[...]) >= threshold
        tm = jnp.abs(yt_ref[...]) >= threshold
        if lane_mask is not None:
            pm = jnp.logical_and(pm, lane_mask)
            tm = jnp.logical_and(tm, lane_mask)
        p = pm.astype(jnp.float32)
        t = tm.astype(jnp.float32)
        # Cross-lane reduce -> XLU (free slot); accumulator RMW touches only a
        # single (r_blk, 1) column instead of a full (r_blk, lane_tile) tile.
        tp_acc[...] += jnp.sum(t * p, axis=1, keepdims=True)
        den_acc[...] += jnp.sum(alpha * p + beta * t, axis=1, keepdims=True)

    if tail_valid is None:
        # Lane tiles divide the row length exactly: always the unmasked path.
        _accumulate()
    else:
        # Ragged lane tail: mask only in the final lane block; interior steps
        # run the unmasked fast path (no iota/compare/and per element).
        @pl.when(k != k_last)
        def _fast():
            _accumulate()

        @pl.when(k == k_last)
        def _tail():
            lane_idx = jax.lax.broadcasted_iota(jnp.int32, (r_blk, lane_tile), 1)
            _accumulate(lane_mask=lane_idx < tail_valid)

    @pl.when(k == k_last)
    def _finalize():
        # Lane-dense stores of the raw partial sums (finalized in JAX).
        tp_out[...] = jnp.broadcast_to(tp_acc[...], (r_blk, 128))
        den_out[...] = jnp.broadcast_to(den_acc[...], (r_blk, 128))


def _vmem_capacity_bytes():
    try:
        return int(pltpu.get_tpu_info().vmem_capacity_bytes)
    except Exception:
        return 64 << 20  # conservative (v7x-sized) fallback


def _choose_fold(R, N, target_rows, min_lanes):
    """Largest f with N % f == 0, R*f ~<= target_rows and N//f >= min_lanes."""
    if R >= target_rows or N < 2 * min_lanes:
        return 1
    max_f = min(max(1, target_rows // R), N // min_lanes)
    for f in range(max_f, 1, -1):
        if N % f == 0:
            return f
    return 1


def tversky_loss(y_pred, y_true, *, alpha=0.3, beta=0.7, eps=1e-6,
                 threshold=0.01, dims=2, max_lane_tile=4096, max_row_block=128):
    shape = y_pred.shape
    assert y_true.shape == shape
    R = int(math.prod(shape[:dims]))
    N = int(math.prod(shape[dims:]))

    # Fold part of the reduction axis into the row axis so DMA blocks stay
    # >= ~1 MiB and grid_r >= 2 even when B*C is tiny.
    fold = _choose_fold(R, N, target_rows=2 * max_row_block, min_lanes=512)
    Rf, Nf = R * fold, N // fold

    # Contiguous reshape only (no pad, no cast).
    yp = jnp.reshape(y_pred, (Rf, Nf))
    yt = jnp.reshape(y_true, (Rf, Nf))

    # Row (sublane) tiling.
    if Rf <= max_row_block:
        r_blk = Rf
    else:
        r_blk = (max_row_block // 8) * 8
        assert r_blk > 0
    grid_r = pl.cdiv(Rf, r_blk)

    # Lane (reduction) tiling, sized against a generation-aware VMEM budget.
    itemsize = jnp.dtype(yp.dtype).itemsize
    vmem_budget = int(_vmem_capacity_bytes() * 0.45)
    if Nf <= max_lane_tile:
        lane_tile = Nf
    else:
        lane_tile = (max_lane_tile // 128) * 128
        assert lane_tile > 0
    while lane_tile > 128 and 4 * r_blk * lane_tile * itemsize > int(vmem_budget * 0.7):
        lane_tile = max(128, (lane_tile // 2 // 128) * 128)
    grid_n = pl.cdiv(Nf, lane_tile)

    # Static size of the valid portion of the last lane block (None => no tail).
    rem = Nf - (grid_n - 1) * lane_tile
    tail_valid = None if rem == lane_tile else rem

    vmem_bytes = (2 * 2 * r_blk * lane_tile * itemsize   # double-buffered inputs
                  + 2 * 2 * r_blk * 128 * 4              # double-buffered outputs
                  + 2 * r_blk * 128 * 4)                 # (r_blk,1) accumulators (padded)
    vmem_limit = min(max(2 * vmem_bytes, 16 << 20), vmem_budget)
    vmem_limit = max(vmem_limit, vmem_bytes + (1 << 20))

    kernel = functools.partial(
        _tversky_partial_kernel,
        alpha=float(alpha), beta=float(beta), threshold=float(threshold),
        r_blk=r_blk, lane_tile=lane_tile, tail_valid=tail_valid,
    )

    out_rows = grid_r * r_blk
    tp_part, den_part = pl.pallas_call(
        kernel,
        out_shape=(
            jax.ShapeDtypeStruct((out_rows, 128), jnp.float32),
            jax.ShapeDtypeStruct((out_rows, 128), jnp.float32),
        ),
        grid_spec=pltpu.PrefetchScalarGridSpec(
            num_scalar_prefetch=0,
            grid=(grid_r, grid_n),
            in_specs=[
                pl.BlockSpec((r_blk, lane_tile), lambda i, k: (i, k)),
                pl.BlockSpec((r_blk, lane_tile), lambda i, k: (i, k)),
            ],
            out_specs=(
                pl.BlockSpec((r_blk, 128), lambda i, k: (i, 0)),
                pl.BlockSpec((r_blk, 128), lambda i, k: (i, 0)),
            ),
            scratch_shapes=[
                pltpu.VMEM((r_blk, 1), jnp.float32),   # per-row tp partial
                pltpu.VMEM((r_blk, 1), jnp.float32),   # per-row alpha*P + beta*T
            ],
        ),
        compiler_params=pltpu.CompilerParams(
            dimension_semantics=("parallel", "arbitrary"),
            vmem_limit_bytes=int(vmem_limit),
        ),
    )(yp, yt)

    # Combine fold-partials per original row and finalize in plain JAX (tiny):
    # the Tversky ratio is NOT additive across partial reductions.
    tp = jnp.sum(jnp.reshape(tp_part[:Rf, 0], (R, fold)), axis=1)
    pt = jnp.sum(jnp.reshape(den_part[:Rf, 0], (R, fold)), axis=1)
    # tp + alpha*fp + beta*fn == alpha*P + beta*T + (1 - alpha - beta)*tp
    denom = pt + (1.0 - alpha - beta) * tp + eps
    loss = 1.0 - (tp + eps) / denom
    return jnp.mean(loss)


def _tversky_ref(y_pred, y_true, alpha=0.3, beta=0.7, eps=1e-6,
                 threshold=0.01, dims=2):
    shape = y_pred.shape
    R = int(math.prod(shape[:dims]))
    N = int(math.prod(shape[dims:]))
    p = (jnp.abs(jnp.reshape(y_pred, (R, N))) >= threshold).astype(jnp.float32)
    t = (jnp.abs(jnp.reshape(y_true, (R, N))) >= threshold).astype(jnp.float32)
    tp = jnp.sum(t * p, axis=1)
    fp = jnp.sum(p, axis=1) - tp
    fn = jnp.sum(t, axis=1) - tp
    coeff = (tp + eps) / (tp + alpha * fp + beta * fn + eps)
    return jnp.mean(1.0 - coeff)


if __name__ == "__main__":
    key = jax.random.PRNGKey(0)
    keys = jax.random.split(key, 8)

    def _check(yp, yt, **kw):
        loss = jax.block_until_ready(tversky_loss(yp, yt, **kw))
        ref = _tversky_ref(yp, yt)
        assert jnp.allclose(loss, ref, atol=1e-5, rtol=1e-5), (loss, ref)

    # Main case: NCHW inputs (batch=2, channels=4, 16x16), single block.
    yp = jax.random.normal(keys[0], (2, 4, 16, 16), dtype=jnp.float32) * 0.05
    yt = jax.random.normal(keys[1], (2, 4, 16, 16), dtype=jnp.float32) * 0.05
    _check(yp, yt)

    # Row-fold path: small R, larger spatial (R=8 folded into pseudo-rows).
    yp = jax.random.normal(keys[2], (2, 4, 64, 64), dtype=jnp.float32) * 0.05
    yt = jax.random.normal(keys[3], (2, 4, 64, 64), dtype=jnp.float32) * 0.05
    _check(yp, yt)

    # Forced multi-block path: row-parallel grid + multi-step lane reduction.
    yp = jax.random.normal(keys[4], (4, 4, 16, 16), dtype=jnp.float32) * 0.05
    yt = jax.random.normal(keys[5], (4, 4, 16, 16), dtype=jnp.float32) * 0.05
    _check(yp, yt, max_lane_tile=128, max_row_block=8)

    # Ragged rows (R=12) and ragged lane tail (N=200): exercises the tail mask.
    yp = jax.random.normal(keys[6], (3, 4, 10, 20), dtype=jnp.float32) * 0.05
    yt = jax.random.normal(keys[7], (3, 4, 10, 20), dtype=jnp.float32) * 0.05
    _check(yp, yt, max_lane_tile=128, max_row_block=8)

    print("KERNEL_OK")
</pallas_src>

<mosaic_0001>
module attributes {stable_mosaic.version = 11 : i64} {
  func.func @_tversky_partial_kernel(%arg0: i32, %arg1: i32, %arg2: memref<8x256xf32, #tpu.memory_space<vmem>>, %arg3: memref<8x256xf32, #tpu.memory_space<vmem>>, %arg4: memref<8x128xf32, #tpu.memory_space<vmem>>, %arg5: memref<8x128xf32, #tpu.memory_space<vmem>>, %arg6: memref<8x1xf32, #tpu.memory_space<vmem>>, %arg7: memref<8x1xf32, #tpu.memory_space<vmem>>) attributes {dimension_semantics = [#tpu.dimension_semantics<parallel>, #tpu.dimension_semantics<arbitrary>], iteration_bounds = array<i64: 1, 1>, scalar_prefetch = 0 : i64, scratch_operands = 2 : i64, tpu.core_type = #tpu.core_type<tc>, window_params = [{transform_indices = @transform_0, window_bounds = array<i64: 8, 256>}, {transform_indices = @transform_1, window_bounds = array<i64: 8, 256>}, {transform_indices = @transform_2, window_bounds = array<i64: 8, 128>}, {transform_indices = @transform_3, window_bounds = array<i64: 8, 128>}]} {
    %c0_i32 = arith.constant 0 : i32
    %0 = arith.cmpi eq, %arg1, %c0_i32 : i32
    %1 = arith.extui %0 : i1 to i32
    %c0_i32_0 = arith.constant 0 : i32
    %2 = arith.cmpi ne, %1, %c0_i32_0 : i32
    scf.if %2 {
      %cst_19 = arith.constant 0.000000e+00 : f32
      %34 = vector.broadcast %cst_19 : f32 to vector<8x1xf32>
      %c0_20 = arith.constant 0 : index
      %c0_21 = arith.constant 0 : index
      %35 = vector.load %arg6[%c0_20, %c0_21] : memref<8x1xf32, #tpu.memory_space<vmem>>, vector<8x1xf32>
      tpu.vector_store %arg6[%c0_20, %c0_21], %34 {strides = array<i32>} : memref<8x1xf32, #tpu.memory_space<vmem>>, vector<8x1xf32>,
      %cst_22 = arith.constant 0.000000e+00 : f32
      %36 = vector.broadcast %cst_22 : f32 to vector<8x1xf32>
      %c0_23 = arith.constant 0 : index
      %c0_24 = arith.constant 0 : index
      %37 = vector.load %arg7[%c0_23, %c0_24] : memref<8x1xf32, #tpu.memory_space<vmem>>, vector<8x1xf32>
      tpu.vector_store %arg7[%c0_23, %c0_24], %36 {strides = array<i32>} : memref<8x1xf32, #tpu.memory_space<vmem>>, vector<8x1xf32>,
    } else {
    }
    %c0 = arith.constant 0 : index
    %c0_1 = arith.constant 0 : index
    %3 = vector.load %arg2[%c0, %c0_1] : memref<8x256xf32, #tpu.memory_space<vmem>>, vector<8x256xf32>
    %4 = math.absf %3 : vector<8x256xf32>
    %cst = arith.constant 0.00999999977 : f32
    %5 = vector.broadcast %cst : f32 to vector<8x256xf32>
    %6 = arith.cmpf oge, %4, %5 : vector<8x256xf32>
    %c0_2 = arith.constant 0 : index
    %c0_3 = arith.constant 0 : index
    %7 = vector.load %arg3[%c0_2, %c0_3] : memref<8x256xf32, #tpu.memory_space<vmem>>, vector<8x256xf32>
    %8 = math.absf %7 : vector<8x256xf32>
    %cst_4 = arith.constant 0.00999999977 : f32
    %9 = vector.broadcast %cst_4 : f32 to vector<8x256xf32>
    %10 = arith.cmpf oge, %8, %9 : vector<8x256xf32>
    %11 = arith.extui %6 : vector<8x256xi1> to vector<8x256xi32>
    %12 = arith.sitofp %11 : vector<8x256xi32> to vector<8x256xf32>
    %13 = arith.extui %10 : vector<8x256xi1> to vector<8x256xi32>
    %14 = arith.sitofp %13 : vector<8x256xi32> to vector<8x256xf32>
    %c0_5 = arith.constant 0 : index
    %c0_6 = arith.constant 0 : index
    %15 = vector.load %arg6[%c0_5, %c0_6] : memref<8x1xf32, #tpu.memory_space<vmem>>, vector<8x1xf32>
    %16 = arith.mulf %14, %12 : vector<8x256xf32>
    %cst_7 = arith.constant dense<0.000000e+00> : vector<8xf32>
    %17 = vector.multi_reduction <add>, %16, %cst_7 [1] : vector<8x256xf32> to vector<8xf32>
    %18 = vector.shape_cast %17 : vector<8xf32> to vector<8x1xf32>
    %19 = arith.addf %15, %18 : vector<8x1xf32>
    %c0_8 = arith.constant 0 : index
    %c0_9 = arith.constant 0 : index
    %20 = vector.load %arg6[%c0_8, %c0_9] : memref<8x1xf32, #tpu.memory_space<vmem>>, vector<8x1xf32>
    tpu.vector_store %arg6[%c0_8, %c0_9], %19 {strides = array<i32>} : memref<8x1xf32, #tpu.memory_space<vmem>>, vector<8x1xf32>,
    %c0_10 = arith.constant 0 : index
    %c0_11 = arith.constant 0 : index
    %21 = vector.load %arg7[%c0_10, %c0_11] : memref<8x1xf32, #tpu.memory_space<vmem>>, vector<8x1xf32>
    %cst_12 = arith.constant 3.000000e-01 : f32
    %22 = vector.broadcast %cst_12 : f32 to vector<8x256xf32>
    %23 = arith.mulf %22, %12 : vector<8x256xf32>
    %cst_13 = arith.constant 0.699999988 : f32
    %24 = vector.broadcast %cst_13 : f32 to vector<8x256xf32>
    %25 = arith.mulf %24, %14 : vector<8x256xf32>
    %26 = arith.addf %23, %25 : vector<8x256xf32>
    %cst_14 = arith.constant dense<0.000000e+00> : vector<8xf32>
    %27 = vector.multi_reduction <add>, %26, %cst_14 [1] : vector<8x256xf32> to vector<8xf32>
    %28 = vector.shape_cast %27 : vector<8xf32> to vector<8x1xf32>
    %29 = arith.addf %21, %28 : vector<8x1xf32>
    %c0_15 = arith.constant 0 : index
    %c0_16 = arith.constant 0 : index
    %30 = vector.load %arg7[%c0_15, %c0_16] : memref<8x1xf32, #tpu.memory_space<vmem>>, vector<8x1xf32>
    tpu.vector_store %arg7[%c0_15, %c0_16], %29 {strides = array<i32>} : memref<8x1xf32, #tpu.memory_space<vmem>>, vector<8x1xf32>,
    %c0_i32_17 = arith.constant 0 : i32
    %31 = arith.cmpi eq, %arg1, %c0_i32_17 : i32
    %32 = arith.extui %31 : i1 to i32
    %c0_i32_18 = arith.constant 0 : i32
    %33 = arith.cmpi ne, %32, %c0_i32_18 : i32
    scf.if %33 {
      %c0_19 = arith.constant 0 : index
      %c0_20 = arith.constant 0 : index
      %34 = vector.load %arg6[%c0_19, %c0_20] : memref<8x1xf32, #tpu.memory_space<vmem>>, vector<8x1xf32>
      %35 = vector.shape_cast %34 : vector<8x1xf32> to vector<8x1xf32>
      %36 = vector.broadcast %35 : vector<8x1xf32> to vector<8x128xf32>
      %c0_21 = arith.constant 0 : index
      %c0_22 = arith.constant 0 : index
      %37 = vector.load %arg4[%c0_21, %c0_22] : memref<8x128xf32, #tpu.memory_space<vmem>>, vector<8x128xf32>
      tpu.vector_store %arg4[%c0_21, %c0_22], %36 {strides = array<i32>} : memref<8x128xf32, #tpu.memory_space<vmem>>, vector<8x128xf32>,
      %c0_23 = arith.constant 0 : index
      %c0_24 = arith.constant 0 : index
      %38 = vector.load %arg7[%c0_23, %c0_24] : memref<8x1xf32, #tpu.memory_space<vmem>>, vector<8x1xf32>
      %39 = vector.shape_cast %38 : vector<8x1xf32> to vector<8x1xf32>
      %40 = vector.broadcast %39 : vector<8x1xf32> to vector<8x128xf32>
      %c0_25 = arith.constant 0 : index
      %c0_26 = arith.constant 0 : index
      %41 = vector.load %arg5[%c0_25, %c0_26] : memref<8x128xf32, #tpu.memory_space<vmem>>, vector<8x128xf32>
      tpu.vector_store %arg5[%c0_25, %c0_26], %40 {strides = array<i32>} : memref<8x128xf32, #tpu.memory_space<vmem>>, vector<8x128xf32>,
    } else {
    }
    return
  }
  func.func @transform_0(%arg0: i32, %arg1: i32) -> (i32, i32) {
    %c0_i32 = arith.constant 0 : i32
    return %arg0, %arg1 : i32, i32
  }
  func.func @transform_1(%arg0: i32, %arg1: i32) -> (i32, i32) {
    %c0_i32 = arith.constant 0 : i32
    return %arg0, %arg1 : i32, i32
  }
  func.func @transform_2(%arg0: i32, %arg1: i32) -> (i32, i32) {
    %c0_i32 = arith.constant 0 : i32
    %c0_i32_0 = arith.constant 0 : i32
    return %arg0, %c0_i32 : i32, i32
  }
  func.func @transform_3(%arg0: i32, %arg1: i32) -> (i32, i32) {
    %c0_i32 = arith.constant 0 : i32
    %c0_i32_0 = arith.constant 0 : i32
    return %arg0, %c0_i32 : i32, i32
  }
}

</mosaic_0001>

<bundles_post_ra>
// kernel: tpu_custom_call.1
= control target key start
LH: loop header
LB: loop body
LE: loop exit
PB: predicated region body
PF: predicated region fallthrough
CT: control target
= control target key end

     0   :  { %9 = vsyncpa [#allocation5], 0  ;;  %s276_s0 = inlined_call_operand.hbm [shape: f32[8,256], index: 0, kind: input, shape index: {}]   ;;  %s277_s1 = inlined_call_operand.hbm [shape: f32[8,256], index: 1, kind: input, shape index: {}]   ;;  %s278_s2 = inlined_call_operand.hbm [shape: f32[8,128], index: 2, kind: output, shape index: {0}]   ;;  %s279_s3 = inlined_call_operand.hbm [shape: f32[8,128], index: 3, kind: output, shape index: {1}]  }
   0x1   :  { %10 = vsyncpa [#allocation8], 0 }
   0x2   :  { %11 = vsyncpa [#allocation6], 0 }
   0x3   :  { %12 = vsyncpa [#allocation11], 0  ;;  %s234_s12 = smov [#allocation4]   ;;  %s235_s14 = smov [#allocation7]  }
   0x4   :  { %s19_s13 = sshll.u32 %s234_s12, 4  ;;  %s29_s15 = sshll.u32 %s235_s14, 4  ;;  %s20_s13 = int_to_ptr.vmem [resolvable:$true] %s19_s13  ;;  %s30_s15 = int_to_ptr.vmem [resolvable:$true] %s29_s15 }
   0x5   :  { %s154_s16 = scalar_lea.vmem %s20_s13, 256  ;;  %p159_p1 = scmp.lt.s32.totalorder %s20_s13, %s20_s13 }
   0x6   :  { %p155_p0 = scmp.ne.s32.totalorder %s20_s13, %s154_s16  ;;  %p160_p2 = scmp.lt.s32.totalorder %s154_s16, %s154_s16 }
   0x8   :  { %p161_p3 = por %p160_p2, %p159_p1 }
   0xa   :  { %p162_p4 = pnand %p161_p3, %p155_p0 }
   0xc   :  { %165 = shalt.err (!%p162_p4)
}
   0xd   :  { %22 = dma.hbm_to_vmem [thread:$0]  %s276_s0, 256, %s20_s13, [#allocation5]  }
   0xe   :  { %s174_s19 = scalar_lea.vmem %s30_s15, 256  ;;  %p179_p6 = scmp.lt.s32.totalorder %s30_s15, %s30_s15 }
   0xf   :  { %p175_p5 = scmp.ne.s32.totalorder %s30_s15, %s174_s19  ;;  %p180_p7 = scmp.lt.s32.totalorder %s174_s19, %s174_s19 }
  0x11   :  { %p181_p8 = por %p180_p7, %p179_p6 }
  0x13   :  { %p182_p9 = pnand %p181_p8, %p175_p5 }
  0x15   :  { %185 = shalt.err (!%p182_p9)
}
  0x16   :  { %32 = dma.hbm_to_vmem [thread:$0]  %s277_s1, 256, %s30_s15, [#allocation8]  }
  0x17   :  { %226 = dma.done.wait [#allocation5], 256  }
  0x18   :  { %227 = vsyncadd [#allocation5], 4294967040 }
  0x19   :  { %228 = dma.done.wait [#allocation8], 256  }
  0x1a   :  { %229 = vsyncadd [#allocation8], 4294967040  ;;  %vm43_vm0 = vcmask 7168   ;;  %v236_v0 = vmov 0.0   ;;  %v46_v1 = vld [vmem:[#allocation4] sm:$0xff]  ;;  %v47_v2 = vld [vmem:[#allocation4 + $0x8] sm:$0xff] }
  0x1b   :  { %44 = vst.msk [vmem:[#allocation2] sm:$0xff] %vm43_vm0, %v236_v0  ;;  %45 = vst.msk [vmem:[#allocation3] sm:$0xff] %vm43_vm0, %v236_v0  ;;  %v52_v3 = vld [vmem:[#allocation7] sm:$0xff]  ;;  %v48_v4 = vand.u32 2147483647, %v46_v1  ;;  %v53_v6 = vld [vmem:[#allocation7 + $0x8] sm:$0xff] }
  0x1c   :  { %v49_v5 = vand.u32 2147483647, %v47_v2  ;;  %v54_v7 = vand.u32 2147483647, %v52_v3  ;;  %v55_v8 = vand.u32 2147483647, %v53_v6 }
  0x1d   :  { %vm50_vm1 = vcmp.ge.f32.partialorder %v48_v4, 0.01  ;;  %v237_v23 = vmov 0   ;;  %s238_s0 = smov [#allocation9]   ;;  %s239_s22 = smov [#allocation10]  }
  0x1e   :  { %vm51_vm2 = vcmp.ge.f32.partialorder %v49_v5, 0.01  ;;  %vm56_vm3 = vcmp.ge.f32.partialorder %v54_v7, 0.01  ;;  %vm57_vm4 = vcmp.ge.f32.partialorder %v55_v8, 0.01  ;;  %144 = vset.pattern.permute.xlu1 %v237_v23  ;;  %145 = vset.pattern.permute.xlu0 %v237_v23 }
  0x1f   :  { %v134_v9 = vsel %vm50_vm1, 1.0, %v236_v0  ;;  %v135_v10 = vsel %vm51_vm2, 1.0, %v236_v0  ;;  %v136_v11 = vsel %vm56_vm3, 1.0, %v236_v0  ;;  %v137_v12 = vsel %vm57_vm4, 1.0, %v236_v0  ;;  %s110_s1 = sshll.u32 %s238_s0, 4  ;;  %s120_s23 = sshll.u32 %s239_s22, 4  ;;  %s111_s1 = int_to_ptr.vmem [resolvable:$true] %s110_s1  ;;  %s121_s23 = int_to_ptr.vmem [resolvable:$true] %s120_s23 }
  0x20   :  { %v76_v13 = vmul.f32 0.3, %v134_v9  ;;  %v77_v14 = vmul.f32 0.3, %v135_v10  ;;  %v67_v15 = vmul.f32 %v136_v11, %v134_v9  ;;  %v68_v16 = vmul.f32 %v137_v12, %v135_v10  ;;  %s186_s24 = scalar_lea.vmem %s111_s1, 128  ;;  %p191_p11 = scmp.lt.s32.totalorder %s111_s1, %s111_s1 }
  0x21   :  { %v78_v17 = vmul.f32 0.7, %v136_v11  ;;  %v79_v18 = vmul.f32 0.7, %v137_v12  ;;  %p187_p10 = scmp.ne.s32.totalorder %s111_s1, %s186_s24  ;;  %p192_p12 = scmp.lt.s32.totalorder %s186_s24, %s186_s24 }
  0x22   :  { %v69_v19 = vadd.f32 %v68_v16, %v67_v15  ;;  %v66_v24 = vld [vmem:[#allocation2] sm:$0xff]  ;;  %v75_v27 = vld [vmem:[#allocation3] sm:$0xff] }
  0x23   :  { %v80_v20 = vadd.f32 %v78_v17, %v76_v13  ;;  %v81_v21 = vadd.f32 %v79_v18, %v77_v14  ;;  %p193_p13 = por %p192_p12, %p191_p11 }
  0x24   :  { %70 = vadd.xlane.f32.xlu0 %v69_v19 }
  0x25   :  { %v82_v22 = vadd.f32 %v81_v21, %v80_v20  ;;  %p194_p0 = pnand %p193_p13, %p187_p10 }
  0x28   :  { %83 = vadd.xlane.f32.xlu0 %v82_v22 }
  0xad   :  { %v71_v25 = vpop.xlane.xlu0 %70 }
  0xae   :  { %v72_v26 = vadd.f32 %v71_v25, %v66_v24 }
  0xb0   :  { %74 = vst.msk [vmem:[#allocation2] sm:$0xff] %vm43_vm0, %v72_v26 }
  0xb1   :  { %v84_v28 = vpop.xlane.xlu0 %83 }
  0xb2   :  { %v85_v29 = vadd.f32 %v84_v28, %v75_v27 }
  0xb4   :  { %86 = vst.msk [vmem:[#allocation3] sm:$0xff] %vm43_vm0, %v85_v29 }
  0xb7   :  { %v90_v30 = vld [vmem:[#allocation2] sm:$0xff] }
  0xb8   :  { %93 = vperm.xlu1 %144, %v90_v30  }
  0xbb   :  { %v97_v31 = vld [vmem:[#allocation3] sm:$0xff] }
  0xbc   :  { %100 = vperm.xlu1 %144, %v97_v31  }
 0x133   :  { %v94_v32 = vpop.permute.xlu1 %93 }
 0x134   :  { %96 = vst [vmem:[#allocation9] sm:$0xff] %v94_v32 }
 0x135   :  { %197 = shalt.err (!%p194_p0)
}
 0x136   :  { %113 = dma.vmem_to_hbm [thread:$0]  %s111_s1, 128, %s278_s2, [#allocation6]  }
 0x137   :  { %v101_v33 = vpop.permute.xlu1 %100  ;;  %s206_s27 = scalar_lea.vmem %s121_s23, 128  ;;  %p211_p2 = scmp.lt.s32.totalorder %s121_s23, %s121_s23 }
 0x138   :  { %103 = vst [vmem:[#allocation10] sm:$0xff] %v101_v33  ;;  %p207_p1 = scmp.ne.s32.totalorder %s121_s23, %s206_s27  ;;  %p212_p3 = scmp.lt.s32.totalorder %s206_s27, %s206_s27 }
 0x13a   :  { %p213_p4 = por %p212_p3, %p211_p2 }
 0x13c   :  { %p214_p5 = pnand %p213_p4, %p207_p1 }
 0x13e   :  { %217 = shalt.err (!%p214_p5)
}
 0x13f   :  { %123 = dma.vmem_to_hbm [thread:$0]  %s121_s23, 128, %s279_s3, [#allocation11]  }
 0x140   :  { %230 = dma.done.wait [#allocation6], 128  }
 0x141   :  { %231 = vsyncadd [#allocation6], 4294967168 }
 0x142   :  { %232 = dma.done.wait [#allocation11], 128  }
 0x143   :  { %233 = vsyncadd [#allocation11], 4294967168 }
 0x144   :  { %130 = vsyncpa [#allocation5], 1 }
 0x145   :  { %131 = vsyncpa [#allocation8], 1 }
 0x146   :  { %132 = vsyncpa [#allocation6], 1 }
 0x147   :  { %133 = vsyncpa [#allocation11], 1 }

</bundles_post_ra>
